<compile_context>
chip_gen: v5e
topology: v5e:2x2
jax: 0.10.0
libtpu: 0.0.40
codegen_flags: <defaults>
</compile_context>

<pallas_src>
import jax
import jax.numpy as jnp
from jax.experimental import pallas as pl
from jax.experimental.pallas import tpu as pltpu


def _rearrange_kernel(x_ref, o_ref):
    # x_ref: (GV, TL, D)   -- gv variables' row-slabs for this (batch, L-tile, v-group)
    # o_ref: (TL, GV*D)    -- lane-dense output slab; each variable's D-wide stripe
    #                         is copied once, then the whole block is written back
    #                         to HBM as a single contiguous run.
    gv, _, d = x_ref.shape
    for v in range(gv):                      # static unroll; VMEM->VMEM stripe copies
        off = pl.multiple_of(v * d, 128)     # D % 128 == 0 guaranteed by the wrapper
        o_ref[:, pl.ds(off, d)] = x_ref[v]


def _sublane_packing(dtype):
    itemsize = jnp.dtype(dtype).itemsize
    return {4: 8, 2: 16, 1: 32}.get(itemsize, 8)


def _default_working_set_budget():
    """Total VMEM working-set budget for the 2x double-buffered in + out blocks."""
    cap = 128 << 20                               # v5e / v6e physical VMEM
    try:
        cap = int(pltpu.get_tpu_info().vmem_capacity_bytes)   # 64 MiB on v7x
    except Exception:
        pass
    return max(8 << 20, min(cap // 4, 24 << 20))


def _choose_tiling(B, V, L, D, dtype, budget_bytes):
    """Pick (tl, gv): L-tile rows and variable-group size.

    Constraints:
      * D % 128 == 0 (lane-dense, unmasked stripe stores);
      * tl divides L and is a multiple of the dtype sublane packing (or == L);
      * gv divides V;
      * 4 * tl * gv * D * itemsize (double-buffered in + out blocks) <= budget.
    Preference: fold the whole V axis (largest gv), then the largest tl; shrink
    tl only to expose >= 8 parallel grid points (megacore) while keeping blocks
    >= 512 KiB so per-step overhead stays amortized.
    """
    if D % 128 != 0:
        return None
    itemsize = jnp.dtype(dtype).itemsize
    pack = _sublane_packing(dtype)
    l_cands = [t for t in range(L, 0, -1)
               if L % t == 0 and (t % pack == 0 or t == L)]
    if not l_cands:
        return None
    v_cands = [g for g in range(V, 0, -1) if V % g == 0]

    def working_set(tl, gv):
        return 4 * tl * gv * D * itemsize

    chosen = None
    for gv in v_cands:                            # prefer folding all of V first
        feas = [tl for tl in l_cands if working_set(tl, gv) <= budget_bytes]
        if feas:
            chosen = (feas[0], gv)                # largest feasible L tile
            break
    if chosen is None:
        return None
    tl, gv = chosen

    def grid_points(t):
        return B * (L // t) * (V // gv)

    if grid_points(tl) < 8:                       # expose megacore parallelism
        for t in l_cands:                         # descending
            if t >= tl:
                continue
            if t * gv * D * itemsize < (512 << 10):
                break                             # blocks would get too small
            if grid_points(t) >= 8:
                tl = t
                break
    return tl, gv


def pred_rearrange_ref(x, V, L, D):
    """Pure-JAX reference mirroring einops 'b (v l) d -> b l (v d)'."""
    B = x.shape[0]
    x = x.reshape(B, V, L, D)            # b v l d
    x = jnp.transpose(x, (0, 2, 1, 3))   # b l v d
    return x.reshape(B, L, V * D)        # b l (v d)


def pred_rearrange(x, aggregated_variables, num_patches, embed_dim,
                   working_set_budget_bytes=None):
    """x: (B, V*L, D) -> (B, L, V*D), identical to einops 'b (v l) d -> b l (v d)'."""
    B, VL, D = x.shape
    V, L = aggregated_variables, num_patches
    assert VL == V * L and D == embed_dim

    budget = (working_set_budget_bytes if working_set_budget_bytes is not None
              else _default_working_set_budget())
    tiling = _choose_tiling(B, V, L, D, x.dtype, budget)
    if tiling is None:
        # Unaligned case (D % 128 != 0 or no valid L tile): exact XLA fallback.
        return pred_rearrange_ref(x, V, L, D)
    tl, gv = tiling

    itemsize = jnp.dtype(x.dtype).itemsize
    xr = x.reshape(B, V, L, D)                    # free row-major split reshape

    grid = (B, L // tl, V // gv)
    # Input (B, V, L, D): block (1, gv, tl, D); batch dim squeezed in-kernel.
    in_spec = pl.BlockSpec((None, gv, tl, D), lambda b, lt, vg: (b, vg, lt, 0))
    # Output (B, L, V*D): block (1, tl, gv*D).  Every grid point writes a
    # distinct output block exactly once -> all grid axes 'parallel'.
    out_spec = pl.BlockSpec((None, tl, gv * D), lambda b, lt, vg: (b, lt, vg))

    working_set = 4 * tl * gv * D * itemsize      # 2x in + 2x out (double buffered)
    vmem_limit = int(min(48 << 20, max(16 << 20, 2 * working_set + (1 << 20))))

    return pl.pallas_call(
        _rearrange_kernel,
        out_shape=jax.ShapeDtypeStruct((B, L, V * D), x.dtype),
        grid_spec=pltpu.PrefetchScalarGridSpec(
            num_scalar_prefetch=0,
            grid=grid,
            in_specs=[in_spec],
            out_specs=out_spec,
        ),
        compiler_params=pltpu.CompilerParams(
            dimension_semantics=("parallel", "parallel", "parallel"),
            vmem_limit_bytes=vmem_limit,
        ),
        cost_estimate=pl.CostEstimate(
            flops=0,
            transcendentals=0,
            bytes_accessed=2 * B * V * L * D * itemsize,
        ),
    )(xr)


if __name__ == "__main__":
    key = jax.random.PRNGKey(0)

    # Config 1: small shapes consistent with the module's forward
    #   batch B=2, aggregated_variables V=4, num_patches L=8, embed_dim D=128
    B, V, L, D = 2, 4, 8, 128
    x = jax.random.normal(key, (B, V * L, D), dtype=jnp.float32)
    y = jax.block_until_ready(pred_rearrange(x, V, L, D))
    assert y.shape == (B, L, V * D), y.shape
    assert jnp.array_equal(y, pred_rearrange_ref(x, V, L, D)), "mismatch (config 1)"

    # Config 2: tiny budget forces the v-group path (gv < V, 3-D grid with
    # multiple L-tiles and v-groups) — exercises the general tiling.
    B2, V2, L2, D2 = 2, 4, 16, 128
    x2 = jax.random.normal(jax.random.PRNGKey(0), (B2, V2 * L2, D2), dtype=jnp.float32)
    y2 = jax.block_until_ready(
        pred_rearrange(x2, V2, L2, D2, working_set_budget_bytes=32 << 10))
    assert y2.shape == (B2, L2, V2 * D2), y2.shape
    assert jnp.array_equal(y2, pred_rearrange_ref(x2, V2, L2, D2)), "mismatch (config 2)"

    print("KERNEL_OK")
</pallas_src>

<mosaic_0001>
module attributes {stable_mosaic.version = 11 : i64} {
  func.func @_rearrange_kernel(%arg0: i32, %arg1: i32, %arg2: i32, %arg3: memref<1x4x8x128xf32, #tpu.memory_space<vmem>>, %arg4: memref<1x8x512xf32, #tpu.memory_space<vmem>>) attributes {dimension_semantics = [#tpu.dimension_semantics<parallel>, #tpu.dimension_semantics<parallel>, #tpu.dimension_semantics<parallel>], iteration_bounds = array<i64: 2, 1, 1>, scalar_prefetch = 0 : i64, scratch_operands = 0 : i64, tpu.core_type = #tpu.core_type<tc>, window_params = [{transform_indices = @transform_0, window_bounds = array<i64: 1, 4, 8, 128>}, {transform_indices = @transform_1, window_bounds = array<i64: 1, 8, 512>}]} {
    %c0_i32 = arith.constant 0 : i32
    %0 = tpu.assume_multiple %c0_i32, 128 : i32
    %c0 = arith.constant 0 : index
    %c0_0 = arith.constant 0 : index
    %c0_1 = arith.constant 0 : index
    %c0_2 = arith.constant 0 : index
    %1 = vector.load %arg3[%c0, %c0_0, %c0_1, %c0_2] : memref<1x4x8x128xf32, #tpu.memory_space<vmem>>, vector<1x1x8x128xf32>
    %2 = vector.shape_cast %1 : vector<1x1x8x128xf32> to vector<8x128xf32>
    %c0_3 = arith.constant 0 : index
    %c0_4 = arith.constant 0 : index
    %3 = arith.index_cast %0 : i32 to index
    %4 = vector.load %arg4[%c0_3, %c0_4, %3] : memref<1x8x512xf32, #tpu.memory_space<vmem>>, vector<1x8x128xf32>
    %5 = vector.shape_cast %4 : vector<1x8x128xf32> to vector<8x128xf32>
    %6 = vector.shape_cast %2 : vector<8x128xf32> to vector<1x8x128xf32>
    tpu.vector_store %arg4[%c0_3, %c0_4, %3], %6 {strides = array<i32>} : memref<1x8x512xf32, #tpu.memory_space<vmem>>, vector<1x8x128xf32>,
    %c128_i32 = arith.constant 128 : i32
    %7 = tpu.assume_multiple %c128_i32, 128 : i32
    %c0_5 = arith.constant 0 : index
    %c1 = arith.constant 1 : index
    %c0_6 = arith.constant 0 : index
    %c0_7 = arith.constant 0 : index
    %8 = vector.load %arg3[%c0_5, %c1, %c0_6, %c0_7] : memref<1x4x8x128xf32, #tpu.memory_space<vmem>>, vector<1x1x8x128xf32>
    %9 = vector.shape_cast %8 : vector<1x1x8x128xf32> to vector<8x128xf32>
    %c0_8 = arith.constant 0 : index
    %c0_9 = arith.constant 0 : index
    %10 = arith.index_cast %7 : i32 to index
    %11 = vector.load %arg4[%c0_8, %c0_9, %10] : memref<1x8x512xf32, #tpu.memory_space<vmem>>, vector<1x8x128xf32>
    %12 = vector.shape_cast %11 : vector<1x8x128xf32> to vector<8x128xf32>
    %13 = vector.shape_cast %9 : vector<8x128xf32> to vector<1x8x128xf32>
    tpu.vector_store %arg4[%c0_8, %c0_9, %10], %13 {strides = array<i32>} : memref<1x8x512xf32, #tpu.memory_space<vmem>>, vector<1x8x128xf32>,
    %c256_i32 = arith.constant 256 : i32
    %14 = tpu.assume_multiple %c256_i32, 128 : i32
    %c0_10 = arith.constant 0 : index
    %c2 = arith.constant 2 : index
    %c0_11 = arith.constant 0 : index
    %c0_12 = arith.constant 0 : index
    %15 = vector.load %arg3[%c0_10, %c2, %c0_11, %c0_12] : memref<1x4x8x128xf32, #tpu.memory_space<vmem>>, vector<1x1x8x128xf32>
    %16 = vector.shape_cast %15 : vector<1x1x8x128xf32> to vector<8x128xf32>
    %c0_13 = arith.constant 0 : index
    %c0_14 = arith.constant 0 : index
    %17 = arith.index_cast %14 : i32 to index
    %18 = vector.load %arg4[%c0_13, %c0_14, %17] : memref<1x8x512xf32, #tpu.memory_space<vmem>>, vector<1x8x128xf32>
    %19 = vector.shape_cast %18 : vector<1x8x128xf32> to vector<8x128xf32>
    %20 = vector.shape_cast %16 : vector<8x128xf32> to vector<1x8x128xf32>
    tpu.vector_store %arg4[%c0_13, %c0_14, %17], %20 {strides = array<i32>} : memref<1x8x512xf32, #tpu.memory_space<vmem>>, vector<1x8x128xf32>,
    %c384_i32 = arith.constant 384 : i32
    %21 = tpu.assume_multiple %c384_i32, 128 : i32
    %c0_15 = arith.constant 0 : index
    %c3 = arith.constant 3 : index
    %c0_16 = arith.constant 0 : index
    %c0_17 = arith.constant 0 : index
    %22 = vector.load %arg3[%c0_15, %c3, %c0_16, %c0_17] : memref<1x4x8x128xf32, #tpu.memory_space<vmem>>, vector<1x1x8x128xf32>
    %23 = vector.shape_cast %22 : vector<1x1x8x128xf32> to vector<8x128xf32>
    %c0_18 = arith.constant 0 : index
    %c0_19 = arith.constant 0 : index
    %24 = arith.index_cast %21 : i32 to index
    %25 = vector.load %arg4[%c0_18, %c0_19, %24] : memref<1x8x512xf32, #tpu.memory_space<vmem>>, vector<1x8x128xf32>
    %26 = vector.shape_cast %25 : vector<1x8x128xf32> to vector<8x128xf32>
    %27 = vector.shape_cast %23 : vector<8x128xf32> to vector<1x8x128xf32>
    tpu.vector_store %arg4[%c0_18, %c0_19, %24], %27 {strides = array<i32>} : memref<1x8x512xf32, #tpu.memory_space<vmem>>, vector<1x8x128xf32>,
    return
  }
  func.func @transform_0(%arg0: i32, %arg1: i32, %arg2: i32) -> (i32, i32, i32, i32) {
    %c0_i32 = arith.constant 0 : i32
    %c0_i32_0 = arith.constant 0 : i32
    return %arg0, %arg2, %arg1, %c0_i32 : i32, i32, i32, i32
  }
  func.func @transform_1(%arg0: i32, %arg1: i32, %arg2: i32) -> (i32, i32, i32) {
    %c0_i32 = arith.constant 0 : i32
    return %arg0, %arg1, %arg2 : i32, i32, i32
  }
}

</mosaic_0001>

<bundles_post_ra>
// kernel: tpu_custom_call.1
= control target key start
LH: loop header
LB: loop body
LE: loop exit
PB: predicated region body
PF: predicated region fallthrough
CT: control target
= control target key end

     0   :  { %6 = vsyncpa [#allocation3], 0  ;;  %s627_s0 = inlined_call_operand.hbm [shape: f32[2,4,8,128], index: 0, kind: input, shape index: {}]   ;;  %s628_s1 = inlined_call_operand.hbm [shape: f32[2,8,512], index: 1, kind: output, shape index: {}]  }
   0x1   :  { %8 = vsyncpa [#allocation3 + $0x1], 0 }
   0x2   :  { %9 = vsyncpa [#allocation4], 0 }
   0x3   :  { %11 = vsyncpa [#allocation4 + $0x1], 0  ;;  %s507_s6 = smov 0   ;;  %s509_s7 = smov 0  }
   0x4   :  { %s511_s8 = smov 0   ;;  %s513_s9 = smov 0  }
   0x5   :  { %s515_s10 = smov 0   ;;  %s517_s11 = smov 0  }
   0x6 LB: > { %s294_s12 = sadd.s32 4294967295, %s493_s11   ;;  %s295_s13 = sadd.s32 4294967294, %s493_s11   ;;  %s493_s11 = sphi %s517_s11, %s17_s11   ;;  %s489_s10 = sphi %s515_s10, %s637_s10   ;;  %s485_s9 = sphi %s513_s9, %s636_s9   ;;  %s481_s8 = sphi %s511_s8, %s635_s8   ;;  %s477_s7 = sphi %s509_s7, %s634_s7   ;;  %s473_s6 = sphi %s507_s6, %s633_s6  }
   0x7   : > { %s36_s14 = sadd.s32 1, %s489_s10  ;;  %s47_s15 = sadd.s32 1, %s481_s8 }
   0x8   : > { %p38_p0 = scmp.ge.s32.totalorder %s36_s14, 2  ;;  %p54_p1 = scmp.ne.s32.totalorder %s481_s8, %s477_s7 }
   0x9   : > { %p55_p2 = scmp.eq.s32.totalorder %s493_s11, 0  ;;  %p60_p3 = scmp.ne.s32.totalorder %s477_s7, %s473_s6 }
   0xa   : > { %s639_s14 = smov (%p38_p0, %s36_s14), 0  ;;  %p61_p5 = scmp.eq.s32.totalorder %s294_s12, 0 }
   0xb   : > { %p548_p4 = por %p55_p2, %p54_p1  ;;  %s40_s17 = ssub.s32 %s489_s10, %s639_s14 }
   0xc   : > { %p88_p6 = scmp.eq.s32.totalorder %s294_s12, 1  ;;  %p45_p7 = scmp.eq.s32.totalorder %s40_s17, 0 }
   0xd   : > { %p554_p8 = por %p61_p5, %p60_p3  ;;  %p94_p10 = scmp.eq.s32.totalorder %s295_s13, 1 }
   0xe   : > { %p558_p9 = por %p88_p6, %p54_p1  ;;  %p297_p12 = scmp.ge.s32.totalorder %s493_s11, 2 }
   0xf   : > { %s563_s20 = scalar_select %p45_p7, %s481_s8, %s47_s15  }
  0x10   : > { %p565_p11 = por %p94_p10, %p60_p3  ;;  %p329_p13 = scmp.lt.s32.totalorder %s493_s11, 2 }
  0x11   : > { %s114_s22 = sand.u32 1, %s481_s8   ;;  %s315_s24 = sshll.u32 %s489_s10, 5 }
  0x12   : > { %s298_s23 = sshll.u32 %s114_s22, 5  ;;  %s126_s27 = scalar_lea.hbm %s627_s0, %s315_s24 }
  0x13   : > { %s118_s28 = scalar_lea.vmem [#allocation2], %s298_s23  ;;  %s127_s30 = sshll.u32 %s126_s27, 4  ;;  %s128_s30 = int_to_ptr.hbm [resolvable:$true] %s127_s30 }
  0x14   : > { %s129_s29 = sshll.u32 %s118_s28, 4  ;;  %p322_p0 = pnand %p329_p13, %p548_p4  ;;  %s130_s29 = int_to_ptr.vmem [resolvable:$true] %s129_s29 }
  0x15   : > { %p301_p1 = scmp.ge.s32.totalorder %s493_s11, 1  ;;  %s115_s2 = scalar_lea.sflag [#allocation3], %s114_s22 }
  0x16   : > { %s495_s3 = smov 128   ;;  %s496_s4 = smov 8  }
  0x17   : > { %324 = dma.hbm_to_vmem [thread:$0]  (!%p322_p0), %s128_s30, 512, %s130_s29, %s115_s2, %s495_s3, %s495_s3, %s496_s4  }
  0x18   : > { %p137_p2 = scmp.lt.s32.totalorder %s493_s11, 3 }
  0x1a   : > { %p138_p3 = pnand %p301_p1, %p137_p2 }
  0x1b   : > { %s581_s5 = sand.u32 (!%p138_p3), 1, %s477_s7  }
  0x1c   : > { %141 = sbr.rel (%p138_p3) target bundleno = 49 (0x31), region = 24  ;;  %s302_s12 = sshll.u32 (!%p138_p3), %s581_s5, 5 }
  0x1d   : > { %s144_s13 = scalar_lea.sflag (!%p138_p3), [#allocation3], %s581_s5  ;;  %s147_s15 = scalar_lea.vmem (!%p138_p3), [#allocation2], %s302_s12 }
  0x21   : > { %464 = dma.done.wait (%p554_p8), %s144_s13, 512  }
  0x22   : > { %466 = vsyncadd (%p554_p8), %s144_s13, 4294966784  ;;  %s316_s16 = sshll.u32 %s485_s9, 5  ;;  %s166_s24 = scalar_lea.vmem [#allocation5], %s302_s12  ;;  %v169_v0 = vld [vmem:[%s147_s15] sm:$0xff]  ;;  %v304_v1 = vld [vmem:[%s147_s15 + $0x8] sm:$0xff] }
  0x23   : > { %s199_s23 = scalar_lea.hbm %s628_s1, %s316_s16  ;;  %s201_s25 = sshll.u32 %s166_s24, 4  ;;  %v306_v2 = vld [vmem:[%s147_s15 + $0x10] sm:$0xff]  ;;  %170 = vst [vmem:[%s166_s24] sm:$0xff] %v169_v0  ;;  %v308_v3 = vld [vmem:[%s147_s15 + $0x18] sm:$0xff]  ;;  %s202_s25 = int_to_ptr.vmem [resolvable:$true] %s201_s25 }
  0x24   : > { %s203_s26 = sshll.u32 %s199_s23, 4  ;;  %305 = vst [vmem:[%s166_s24 + $0x8] sm:$0xff] %v304_v1  ;;  %s184_s18 = scalar_lea.sflag [#allocation4], %s581_s5  ;;  %s204_s26 = int_to_ptr.hbm [resolvable:$true] %s203_s26 }
  0x25   : > { %307 = vst [vmem:[%s166_s24 + $0x10] sm:$0xff] %v306_v2  ;;  %s425_s9 = sshra.s32 %s204_s26, 4  ;;  %s431_s30 = scalar_lea.hbm %s628_s1, 64  ;;  %s426_s9 = int_to_ptr.hbm [resolvable:$true] %s425_s9 }
  0x26   : > { %309 = vst [vmem:[%s166_s24 + $0x18] sm:$0xff] %v308_v3  ;;  %s427_s27 = scalar_lea.hbm %s426_s9, 32  ;;  %p432_p7 = scmp.lt.s32.totalorder %s426_s9, %s628_s1 }
  0x27   : > { %p428_p4 = scmp.ne.s32.totalorder %s426_s9, %s427_s27  ;;  %p433_p8 = scmp.lt.s32.totalorder %s431_s30, %s427_s27 }
  0x29   : > { %p429_p5 = pnand %p428_p4, %p558_p9  ;;  %p434_p10 = por %p433_p8, %p432_p7 }
  0x2b   : > { %p430_p6 = pneg %p429_p5 }
  0x2d   : > { %p435_p13 = pnand %p434_p10, %p430_p6 }
  0x2f   : > { %438 = shalt.err (!%p435_p13)
}
  0x30   : > { %319 = dma.vmem_to_hbm [thread:$0]  (%p558_p9), %s202_s25, 512, %s204_s26, %s184_s18  }
  0x31 PF: > { %s215_s4 = sand.u32 1, %s473_s6   ;;  %p326_p0 = pnand %p297_p12, %p565_p11 }
  0x32   : > { %s216_s5 = scalar_lea.sflag [#allocation4], %s215_s4 }
  0x33   : > { %p327_p1 = pneg %p326_p0 }
  0x35   : > { %468 = dma.done.wait (%p327_p1), %s216_s5, 512  }
  0x36   : > { %470 = vsyncadd (%p327_p1), %s216_s5, 4294966784  ;;  %s17_s11 = sadd.s32 1, %s493_s11   ;;  %s633_s6 = smov %s477_s7 }
  0x37   : > { %p14_p2 = scmp.ge.s32.totalorder %s17_s11, 4   ;;  %s634_s7 = smov %s481_s8 }
  0x38   : > { %s635_s8 = smov %s563_s20  ;;  %s636_s9 = smov %s489_s10 }
  0x39   : > { %s637_s10 = smov %s639_s14  ;;  %16 = sbr.rel (!%p14_p2) target bundleno = 6 (0x6), region = 75 }
  0x3e   :  { %222 = vsyncpa [#allocation3], 1 }
  0x3f   :  { %224 = vsyncpa [#allocation3 + $0x1], 1 }
  0x40   :  { %225 = vsyncpa [#allocation4], 1 }
  0x41   :  { %227 = vsyncpa [#allocation4 + $0x1], 1 }

</bundles_post_ra>
